<compile_context>
chip_gen: v7x
topology: tpu7x:2x2x1
jax: 0.10.0
libtpu: 0.0.40
codegen_flags: <defaults>
</compile_context>

<pallas_src>
import functools

import jax
import jax.numpy as jnp
from jax.experimental import pallas as pl
from jax.experimental.pallas import tpu as pltpu


def _lstm_kernel(x_ref, wih_ref, whh_ref, b_ref, out_ref, *, hidden_dim, seq_len):
    H = hidden_dim

    # Hot path 1: all input projections at once on the MXU:
    # (S, E)bf16 @ (E, 4H)bf16 -> (S, 4H)f32, bias fused.  (8, 128) f32 == one vreg.
    xw = jnp.dot(x_ref[...], wih_ref[...], preferred_element_type=jnp.float32) + b_ref[...]

    # Recurrent weight loaded once; stays resident in vregs for the whole recurrence.
    w_hh = whh_ref[...]                                    # (H, 4H) bf16

    # h0, c0 = zeros (init_hidden); carried as register values, not VMEM scratch.
    h = jnp.zeros((1, H), jnp.float32)
    c = jnp.zeros((1, H), jnp.float32)

    # Hot path 2: the strictly serial LSTM recurrence, fully unrolled (seq_len is static),
    # so every xw slice is a static sublane select and there is no loop bookkeeping.
    for t in range(seq_len):
        gates = xw[t:t + 1, :] + jnp.dot(
            h.astype(jnp.bfloat16), w_hh, preferred_element_type=jnp.float32)  # (1, 4H) f32
        # Two EUP passes over the whole 128-lane gate vector instead of four 32-lane ones.
        sig = jax.nn.sigmoid(gates)
        tnh = jnp.tanh(gates)
        i_g = sig[:, 0 * H:1 * H]
        f_g = sig[:, 1 * H:2 * H]
        g_g = tnh[:, 2 * H:3 * H]
        o_g = sig[:, 3 * H:4 * H]
        c = f_g * c + i_g * g_g
        h = o_g * jnp.tanh(c)

    # lstm_out[-1] == final hidden state (single layer, batch=1): shape (1, H).
    out_ref[...] = h


def prepare_params(emb_table, w_ih, w_hh, b_ih, b_hh):
    """One-time parameter preparation (parameter-load time, NOT per forward call):
    weight transposition, bias fusion and bf16 casts for MXU-friendly matmul inputs."""
    H = w_hh.shape[1]
    emb_bf16 = jnp.asarray(emb_table).astype(jnp.bfloat16)           # (char_size, E)
    w_ih_t = jnp.transpose(jnp.asarray(w_ih)).astype(jnp.bfloat16)   # (E, 4H)
    w_hh_t = jnp.transpose(jnp.asarray(w_hh)).astype(jnp.bfloat16)   # (H, 4H)
    bias = (jnp.asarray(b_ih) + jnp.asarray(b_hh)).reshape(1, 4 * H).astype(jnp.float32)
    return emb_bf16, w_ih_t, w_hh_t, bias


@jax.jit
def char_lstm_forward(token, emb_bf16, w_ih_t, w_hh_t, bias):
    """Pallas implementation of charLSTM.forward(token) with a fresh zero hidden state.

    token : (S,) int32 char indices
    emb_bf16, w_ih_t, w_hh_t, bias : outputs of prepare_params()
    returns (1, H) float32 == lstm_out[-1]
    """
    S = token.shape[0]
    E = emb_bf16.shape[1]
    H = w_hh_t.shape[0]

    # Glue: embedding gather (tiny; fused into this jit so the whole forward is one launch).
    # TODO(synk): could be folded into the kernel via PrefetchScalarGridSpec row-gather.
    x = emb_bf16[token]                                    # (S, E) bf16

    kernel = functools.partial(_lstm_kernel, hidden_dim=H, seq_len=S)

    out = pl.pallas_call(
        kernel,
        out_shape=jax.ShapeDtypeStruct((1, H), jnp.float32),
        grid=(1,),
        in_specs=[
            pl.BlockSpec((S, E), lambda i: (0, 0)),
            pl.BlockSpec((E, 4 * H), lambda i: (0, 0)),
            pl.BlockSpec((H, 4 * H), lambda i: (0, 0)),
            pl.BlockSpec((1, 4 * H), lambda i: (0, 0)),
        ],
        out_specs=pl.BlockSpec((1, H), lambda i: (0, 0)),
        compiler_params=pltpu.CompilerParams(dimension_semantics=("arbitrary",)),
    )(x, w_ih_t, w_hh_t, bias)
    return out


def _reference_forward(token, emb_table, w_ih, w_hh, b_ih, b_hh):
    """Pure-JAX f32 reference mirroring PyTorch nn.LSTM semantics."""
    H = w_hh.shape[1]
    x = emb_table[token]
    h = jnp.zeros((1, H), jnp.float32)
    c = jnp.zeros((1, H), jnp.float32)
    for t in range(x.shape[0]):
        gates = x[t:t + 1] @ w_ih.T + b_ih + h @ w_hh.T + b_hh
        i_g = jax.nn.sigmoid(gates[:, 0 * H:1 * H])
        f_g = jax.nn.sigmoid(gates[:, 1 * H:2 * H])
        g_g = jnp.tanh(gates[:, 2 * H:3 * H])
        o_g = jax.nn.sigmoid(gates[:, 3 * H:4 * H])
        c = f_g * c + i_g * g_g
        h = o_g * jnp.tanh(c)
    return h


if __name__ == "__main__":
    # Small shapes consistent with charLSTM(char_emb_dim, hidden_dim, char_size)
    char_emb_dim = 16
    hidden_dim = 32
    char_size = 64
    seq_len = 8

    key = jax.random.PRNGKey(0)
    k_emb, k_wih, k_whh, k_bih, k_bhh, k_tok = jax.random.split(key, 6)

    # Deterministic parameter init (PyTorch-like: N(0,1) embedding, U(-1/sqrt(H), 1/sqrt(H)) LSTM)
    emb_table = jax.random.normal(k_emb, (char_size, char_emb_dim), jnp.float32)
    bound = 1.0 / jnp.sqrt(jnp.float32(hidden_dim))
    w_ih = jax.random.uniform(k_wih, (4 * hidden_dim, char_emb_dim), jnp.float32, -bound, bound)
    w_hh = jax.random.uniform(k_whh, (4 * hidden_dim, hidden_dim), jnp.float32, -bound, bound)
    b_ih = jax.random.uniform(k_bih, (4 * hidden_dim,), jnp.float32, -bound, bound)
    b_hh = jax.random.uniform(k_bhh, (4 * hidden_dim,), jnp.float32, -bound, bound)

    token = jax.random.randint(k_tok, (seq_len,), 0, char_size, dtype=jnp.int32)

    params = prepare_params(emb_table, w_ih, w_hh, b_ih, b_hh)   # one-time prep
    out = char_lstm_forward(token, *params)
    out = jax.block_until_ready(out)

    ref = _reference_forward(token, emb_table, w_ih, w_hh, b_ih, b_hh)
    assert out.shape == (1, hidden_dim)
    # bf16 MXU inputs (f32 accumulation / f32 state) -> looser tolerance vs the pure-f32 reference.
    assert jnp.allclose(out, ref, atol=5e-2, rtol=5e-2), "mismatch vs reference"

    print("KERNEL_OK")
</pallas_src>

<mosaic_0001>
module attributes {stable_mosaic.version = 11 : i64} {
  func.func @_lstm_kernel(%arg0: i32, %arg1: memref<8x16xbf16, #tpu.memory_space<vmem>>, %arg2: memref<16x128xbf16, #tpu.memory_space<vmem>>, %arg3: memref<32x128xbf16, #tpu.memory_space<vmem>>, %arg4: memref<1x128xf32, #tpu.memory_space<vmem>>, %arg5: memref<1x32xf32, #tpu.memory_space<vmem>>) attributes {dimension_semantics = [#tpu.dimension_semantics<arbitrary>], iteration_bounds = array<i64: 1>, scalar_prefetch = 0 : i64, scratch_operands = 0 : i64, tpu.core_type = #tpu.core_type<tc>, window_params = [{pipeline_mode = #tpu.pipeline_mode<synchronous>, transform_indices = @transform_0, window_bounds = array<i64: 8, 16>}, {pipeline_mode = #tpu.pipeline_mode<synchronous>, transform_indices = @transform_1, window_bounds = array<i64: 16, 128>}, {pipeline_mode = #tpu.pipeline_mode<synchronous>, transform_indices = @transform_2, window_bounds = array<i64: 32, 128>}, {pipeline_mode = #tpu.pipeline_mode<synchronous>, transform_indices = @transform_3, window_bounds = array<i64: 1, 128>}, {pipeline_mode = #tpu.pipeline_mode<synchronous>, transform_indices = @transform_4, window_bounds = array<i64: 1, 32>}]} {
    %c0 = arith.constant 0 : index
    %c0_0 = arith.constant 0 : index
    %0 = vector.load %arg1[%c0, %c0_0] : memref<8x16xbf16, #tpu.memory_space<vmem>>, vector<8x16xbf16>
    %c0_1 = arith.constant 0 : index
    %c0_2 = arith.constant 0 : index
    %1 = vector.load %arg2[%c0_1, %c0_2] : memref<16x128xbf16, #tpu.memory_space<vmem>>, vector<16x128xbf16>
    %cst = arith.constant dense<0.000000e+00> : vector<8x128xf32>
    %2 = tpu.matmul %0, %1, %cst {dimension_numbers = #tpu.dot_dimension_numbers<[1], [0], [0], [1], [0, 0, 1, 1], [], []>} : vector<8x16xbf16>, vector<16x128xbf16>, vector<8x128xf32> -> vector<8x128xf32>
    %c0_3 = arith.constant 0 : index
    %c0_4 = arith.constant 0 : index
    %3 = vector.load %arg4[%c0_3, %c0_4] : memref<1x128xf32, #tpu.memory_space<vmem>>, vector<1x128xf32>
    %4 = vector.broadcast %3 : vector<1x128xf32> to vector<8x128xf32>
    %5 = arith.addf %2, %4 : vector<8x128xf32>
    %c0_5 = arith.constant 0 : index
    %c0_6 = arith.constant 0 : index
    %6 = vector.load %arg3[%c0_5, %c0_6] : memref<32x128xbf16, #tpu.memory_space<vmem>>, vector<32x128xbf16>
    %cst_7 = arith.constant 0.000000e+00 : f32
    %7 = vector.broadcast %cst_7 : f32 to vector<1x32xf32>
    %cst_8 = arith.constant 0.000000e+00 : f32
    %8 = vector.broadcast %cst_8 : f32 to vector<1x32xf32>
    %9 = vector.extract_strided_slice %5 {offsets = [0, 0], sizes = [1, 128], strides = [1, 1]} : vector<8x128xf32> to vector<1x128xf32>
    %10 = arith.truncf %7 : vector<1x32xf32> to vector<1x32xbf16>
    %cst_9 = arith.constant dense<0.000000e+00> : vector<1x128xf32>
    %11 = tpu.matmul %10, %6, %cst_9 {dimension_numbers = #tpu.dot_dimension_numbers<[1], [0], [0], [1], [0, 0, 1, 1], [], []>} : vector<1x32xbf16>, vector<32x128xbf16>, vector<1x128xf32> -> vector<1x128xf32>
    %12 = arith.addf %9, %11 : vector<1x128xf32>
    %13 = arith.negf %12 : vector<1x128xf32>
    %14 = math.exp %13 : vector<1x128xf32>
    %cst_10 = arith.constant 1.000000e+00 : f32
    %15 = vector.broadcast %cst_10 : f32 to vector<1x128xf32>
    %16 = arith.addf %15, %14 : vector<1x128xf32>
    %17 = arith.divf %15, %16 : vector<1x128xf32>
    %18 = math.tanh %12 : vector<1x128xf32>
    %19 = vector.extract_strided_slice %17 {offsets = [0, 0], sizes = [1, 32], strides = [1, 1]} : vector<1x128xf32> to vector<1x32xf32>
    %20 = vector.extract_strided_slice %17 {offsets = [0, 32], sizes = [1, 32], strides = [1, 1]} : vector<1x128xf32> to vector<1x32xf32>
    %21 = vector.extract_strided_slice %18 {offsets = [0, 64], sizes = [1, 32], strides = [1, 1]} : vector<1x128xf32> to vector<1x32xf32>
    %22 = vector.extract_strided_slice %17 {offsets = [0, 96], sizes = [1, 32], strides = [1, 1]} : vector<1x128xf32> to vector<1x32xf32>
    %23 = arith.mulf %20, %8 : vector<1x32xf32>
    %24 = arith.mulf %19, %21 : vector<1x32xf32>
    %25 = arith.addf %23, %24 : vector<1x32xf32>
    %26 = math.tanh %25 : vector<1x32xf32>
    %27 = arith.mulf %22, %26 : vector<1x32xf32>
    %28 = vector.extract_strided_slice %5 {offsets = [1, 0], sizes = [1, 128], strides = [1, 1]} : vector<8x128xf32> to vector<1x128xf32>
    %29 = arith.truncf %27 : vector<1x32xf32> to vector<1x32xbf16>
    %cst_11 = arith.constant dense<0.000000e+00> : vector<1x128xf32>
    %30 = tpu.matmul %29, %6, %cst_11 {dimension_numbers = #tpu.dot_dimension_numbers<[1], [0], [0], [1], [0, 0, 1, 1], [], []>} : vector<1x32xbf16>, vector<32x128xbf16>, vector<1x128xf32> -> vector<1x128xf32>
    %31 = arith.addf %28, %30 : vector<1x128xf32>
    %32 = arith.negf %31 : vector<1x128xf32>
    %33 = math.exp %32 : vector<1x128xf32>
    %cst_12 = arith.constant 1.000000e+00 : f32
    %34 = vector.broadcast %cst_12 : f32 to vector<1x128xf32>
    %35 = arith.addf %34, %33 : vector<1x128xf32>
    %36 = arith.divf %34, %35 : vector<1x128xf32>
    %37 = math.tanh %31 : vector<1x128xf32>
    %38 = vector.extract_strided_slice %36 {offsets = [0, 0], sizes = [1, 32], strides = [1, 1]} : vector<1x128xf32> to vector<1x32xf32>
    %39 = vector.extract_strided_slice %36 {offsets = [0, 32], sizes = [1, 32], strides = [1, 1]} : vector<1x128xf32> to vector<1x32xf32>
    %40 = vector.extract_strided_slice %37 {offsets = [0, 64], sizes = [1, 32], strides = [1, 1]} : vector<1x128xf32> to vector<1x32xf32>
    %41 = vector.extract_strided_slice %36 {offsets = [0, 96], sizes = [1, 32], strides = [1, 1]} : vector<1x128xf32> to vector<1x32xf32>
    %42 = arith.mulf %39, %25 : vector<1x32xf32>
    %43 = arith.mulf %38, %40 : vector<1x32xf32>
    %44 = arith.addf %42, %43 : vector<1x32xf32>
    %45 = math.tanh %44 : vector<1x32xf32>
    %46 = arith.mulf %41, %45 : vector<1x32xf32>
    %47 = vector.extract_strided_slice %5 {offsets = [2, 0], sizes = [1, 128], strides = [1, 1]} : vector<8x128xf32> to vector<1x128xf32>
    %48 = arith.truncf %46 : vector<1x32xf32> to vector<1x32xbf16>
    %cst_13 = arith.constant dense<0.000000e+00> : vector<1x128xf32>
    %49 = tpu.matmul %48, %6, %cst_13 {dimension_numbers = #tpu.dot_dimension_numbers<[1], [0], [0], [1], [0, 0, 1, 1], [], []>} : vector<1x32xbf16>, vector<32x128xbf16>, vector<1x128xf32> -> vector<1x128xf32>
    %50 = arith.addf %47, %49 : vector<1x128xf32>
    %51 = arith.negf %50 : vector<1x128xf32>
    %52 = math.exp %51 : vector<1x128xf32>
    %cst_14 = arith.constant 1.000000e+00 : f32
    %53 = vector.broadcast %cst_14 : f32 to vector<1x128xf32>
    %54 = arith.addf %53, %52 : vector<1x128xf32>
    %55 = arith.divf %53, %54 : vector<1x128xf32>
    %56 = math.tanh %50 : vector<1x128xf32>
    %57 = vector.extract_strided_slice %55 {offsets = [0, 0], sizes = [1, 32], strides = [1, 1]} : vector<1x128xf32> to vector<1x32xf32>
    %58 = vector.extract_strided_slice %55 {offsets = [0, 32], sizes = [1, 32], strides = [1, 1]} : vector<1x128xf32> to vector<1x32xf32>
    %59 = vector.extract_strided_slice %56 {offsets = [0, 64], sizes = [1, 32], strides = [1, 1]} : vector<1x128xf32> to vector<1x32xf32>
    %60 = vector.extract_strided_slice %55 {offsets = [0, 96], sizes = [1, 32], strides = [1, 1]} : vector<1x128xf32> to vector<1x32xf32>
    %61 = arith.mulf %58, %44 : vector<1x32xf32>
    %62 = arith.mulf %57, %59 : vector<1x32xf32>
    %63 = arith.addf %61, %62 : vector<1x32xf32>
    %64 = math.tanh %63 : vector<1x32xf32>
    %65 = arith.mulf %60, %64 : vector<1x32xf32>
    %66 = vector.extract_strided_slice %5 {offsets = [3, 0], sizes = [1, 128], strides = [1, 1]} : vector<8x128xf32> to vector<1x128xf32>
    %67 = arith.truncf %65 : vector<1x32xf32> to vector<1x32xbf16>
    %cst_15 = arith.constant dense<0.000000e+00> : vector<1x128xf32>
    %68 = tpu.matmul %67, %6, %cst_15 {dimension_numbers = #tpu.dot_dimension_numbers<[1], [0], [0], [1], [0, 0, 1, 1], [], []>} : vector<1x32xbf16>, vector<32x128xbf16>, vector<1x128xf32> -> vector<1x128xf32>
    %69 = arith.addf %66, %68 : vector<1x128xf32>
    %70 = arith.negf %69 : vector<1x128xf32>
    %71 = math.exp %70 : vector<1x128xf32>
    %cst_16 = arith.constant 1.000000e+00 : f32
    %72 = vector.broadcast %cst_16 : f32 to vector<1x128xf32>
    %73 = arith.addf %72, %71 : vector<1x128xf32>
    %74 = arith.divf %72, %73 : vector<1x128xf32>
    %75 = math.tanh %69 : vector<1x128xf32>
    %76 = vector.extract_strided_slice %74 {offsets = [0, 0], sizes = [1, 32], strides = [1, 1]} : vector<1x128xf32> to vector<1x32xf32>
    %77 = vector.extract_strided_slice %74 {offsets = [0, 32], sizes = [1, 32], strides = [1, 1]} : vector<1x128xf32> to vector<1x32xf32>
    %78 = vector.extract_strided_slice %75 {offsets = [0, 64], sizes = [1, 32], strides = [1, 1]} : vector<1x128xf32> to vector<1x32xf32>
    %79 = vector.extract_strided_slice %74 {offsets = [0, 96], sizes = [1, 32], strides = [1, 1]} : vector<1x128xf32> to vector<1x32xf32>
    %80 = arith.mulf %77, %63 : vector<1x32xf32>
    %81 = arith.mulf %76, %78 : vector<1x32xf32>
    %82 = arith.addf %80, %81 : vector<1x32xf32>
    %83 = math.tanh %82 : vector<1x32xf32>
    %84 = arith.mulf %79, %83 : vector<1x32xf32>
    %85 = vector.extract_strided_slice %5 {offsets = [4, 0], sizes = [1, 128], strides = [1, 1]} : vector<8x128xf32> to vector<1x128xf32>
    %86 = arith.truncf %84 : vector<1x32xf32> to vector<1x32xbf16>
    %cst_17 = arith.constant dense<0.000000e+00> : vector<1x128xf32>
    %87 = tpu.matmul %86, %6, %cst_17 {dimension_numbers = #tpu.dot_dimension_numbers<[1], [0], [0], [1], [0, 0, 1, 1], [], []>} : vector<1x32xbf16>, vector<32x128xbf16>, vector<1x128xf32> -> vector<1x128xf32>
    %88 = arith.addf %85, %87 : vector<1x128xf32>
    %89 = arith.negf %88 : vector<1x128xf32>
    %90 = math.exp %89 : vector<1x128xf32>
    %cst_18 = arith.constant 1.000000e+00 : f32
    %91 = vector.broadcast %cst_18 : f32 to vector<1x128xf32>
    %92 = arith.addf %91, %90 : vector<1x128xf32>
    %93 = arith.divf %91, %92 : vector<1x128xf32>
    %94 = math.tanh %88 : vector<1x128xf32>
    %95 = vector.extract_strided_slice %93 {offsets = [0, 0], sizes = [1, 32], strides = [1, 1]} : vector<1x128xf32> to vector<1x32xf32>
    %96 = vector.extract_strided_slice %93 {offsets = [0, 32], sizes = [1, 32], strides = [1, 1]} : vector<1x128xf32> to vector<1x32xf32>
    %97 = vector.extract_strided_slice %94 {offsets = [0, 64], sizes = [1, 32], strides = [1, 1]} : vector<1x128xf32> to vector<1x32xf32>
    %98 = vector.extract_strided_slice %93 {offsets = [0, 96], sizes = [1, 32], strides = [1, 1]} : vector<1x128xf32> to vector<1x32xf32>
    %99 = arith.mulf %96, %82 : vector<1x32xf32>
    %100 = arith.mulf %95, %97 : vector<1x32xf32>
    %101 = arith.addf %99, %100 : vector<1x32xf32>
    %102 = math.tanh %101 : vector<1x32xf32>
    %103 = arith.mulf %98, %102 : vector<1x32xf32>
    %104 = vector.extract_strided_slice %5 {offsets = [5, 0], sizes = [1, 128], strides = [1, 1]} : vector<8x128xf32> to vector<1x128xf32>
    %105 = arith.truncf %103 : vector<1x32xf32> to vector<1x32xbf16>
    %cst_19 = arith.constant dense<0.000000e+00> : vector<1x128xf32>
    %106 = tpu.matmul %105, %6, %cst_19 {dimension_numbers = #tpu.dot_dimension_numbers<[1], [0], [0], [1], [0, 0, 1, 1], [], []>} : vector<1x32xbf16>, vector<32x128xbf16>, vector<1x128xf32> -> vector<1x128xf32>
    %107 = arith.addf %104, %106 : vector<1x128xf32>
    %108 = arith.negf %107 : vector<1x128xf32>
    %109 = math.exp %108 : vector<1x128xf32>
    %cst_20 = arith.constant 1.000000e+00 : f32
    %110 = vector.broadcast %cst_20 : f32 to vector<1x128xf32>
    %111 = arith.addf %110, %109 : vector<1x128xf32>
    %112 = arith.divf %110, %111 : vector<1x128xf32>
    %113 = math.tanh %107 : vector<1x128xf32>
    %114 = vector.extract_strided_slice %112 {offsets = [0, 0], sizes = [1, 32], strides = [1, 1]} : vector<1x128xf32> to vector<1x32xf32>
    %115 = vector.extract_strided_slice %112 {offsets = [0, 32], sizes = [1, 32], strides = [1, 1]} : vector<1x128xf32> to vector<1x32xf32>
    %116 = vector.extract_strided_slice %113 {offsets = [0, 64], sizes = [1, 32], strides = [1, 1]} : vector<1x128xf32> to vector<1x32xf32>
    %117 = vector.extract_strided_slice %112 {offsets = [0, 96], sizes = [1, 32], strides = [1, 1]} : vector<1x128xf32> to vector<1x32xf32>
    %118 = arith.mulf %115, %101 : vector<1x32xf32>
    %119 = arith.mulf %114, %116 : vector<1x32xf32>
    %120 = arith.addf %118, %119 : vector<1x32xf32>
    %121 = math.tanh %120 : vector<1x32xf32>
    %122 = arith.mulf %117, %121 : vector<1x32xf32>
    %123 = vector.extract_strided_slice %5 {offsets = [6, 0], sizes = [1, 128], strides = [1, 1]} : vector<8x128xf32> to vector<1x128xf32>
    %124 = arith.truncf %122 : vector<1x32xf32> to vector<1x32xbf16>
    %cst_21 = arith.constant dense<0.000000e+00> : vector<1x128xf32>
    %125 = tpu.matmul %124, %6, %cst_21 {dimension_numbers = #tpu.dot_dimension_numbers<[1], [0], [0], [1], [0, 0, 1, 1], [], []>} : vector<1x32xbf16>, vector<32x128xbf16>, vector<1x128xf32> -> vector<1x128xf32>
    %126 = arith.addf %123, %125 : vector<1x128xf32>
    %127 = arith.negf %126 : vector<1x128xf32>
    %128 = math.exp %127 : vector<1x128xf32>
    %cst_22 = arith.constant 1.000000e+00 : f32
    %129 = vector.broadcast %cst_22 : f32 to vector<1x128xf32>
    %130 = arith.addf %129, %128 : vector<1x128xf32>
    %131 = arith.divf %129, %130 : vector<1x128xf32>
    %132 = math.tanh %126 : vector<1x128xf32>
    %133 = vector.extract_strided_slice %131 {offsets = [0, 0], sizes = [1, 32], strides = [1, 1]} : vector<1x128xf32> to vector<1x32xf32>
    %134 = vector.extract_strided_slice %131 {offsets = [0, 32], sizes = [1, 32], strides = [1, 1]} : vector<1x128xf32> to vector<1x32xf32>
    %135 = vector.extract_strided_slice %132 {offsets = [0, 64], sizes = [1, 32], strides = [1, 1]} : vector<1x128xf32> to vector<1x32xf32>
    %136 = vector.extract_strided_slice %131 {offsets = [0, 96], sizes = [1, 32], strides = [1, 1]} : vector<1x128xf32> to vector<1x32xf32>
    %137 = arith.mulf %134, %120 : vector<1x32xf32>
    %138 = arith.mulf %133, %135 : vector<1x32xf32>
    %139 = arith.addf %137, %138 : vector<1x32xf32>
    %140 = math.tanh %139 : vector<1x32xf32>
    %141 = arith.mulf %136, %140 : vector<1x32xf32>
    %142 = vector.extract_strided_slice %5 {offsets = [7, 0], sizes = [1, 128], strides = [1, 1]} : vector<8x128xf32> to vector<1x128xf32>
    %143 = arith.truncf %141 : vector<1x32xf32> to vector<1x32xbf16>
    %cst_23 = arith.constant dense<0.000000e+00> : vector<1x128xf32>
    %144 = tpu.matmul %143, %6, %cst_23 {dimension_numbers = #tpu.dot_dimension_numbers<[1], [0], [0], [1], [0, 0, 1, 1], [], []>} : vector<1x32xbf16>, vector<32x128xbf16>, vector<1x128xf32> -> vector<1x128xf32>
    %145 = arith.addf %142, %144 : vector<1x128xf32>
    %146 = arith.negf %145 : vector<1x128xf32>
    %147 = math.exp %146 : vector<1x128xf32>
    %cst_24 = arith.constant 1.000000e+00 : f32
    %148 = vector.broadcast %cst_24 : f32 to vector<1x128xf32>
    %149 = arith.addf %148, %147 : vector<1x128xf32>
    %150 = arith.divf %148, %149 : vector<1x128xf32>
    %151 = math.tanh %145 : vector<1x128xf32>
    %152 = vector.extract_strided_slice %150 {offsets = [0, 0], sizes = [1, 32], strides = [1, 1]} : vector<1x128xf32> to vector<1x32xf32>
    %153 = vector.extract_strided_slice %150 {offsets = [0, 32], sizes = [1, 32], strides = [1, 1]} : vector<1x128xf32> to vector<1x32xf32>
    %154 = vector.extract_strided_slice %151 {offsets = [0, 64], sizes = [1, 32], strides = [1, 1]} : vector<1x128xf32> to vector<1x32xf32>
    %155 = vector.extract_strided_slice %150 {offsets = [0, 96], sizes = [1, 32], strides = [1, 1]} : vector<1x128xf32> to vector<1x32xf32>
    %156 = arith.mulf %153, %139 : vector<1x32xf32>
    %157 = arith.mulf %152, %154 : vector<1x32xf32>
    %158 = arith.addf %156, %157 : vector<1x32xf32>
    %159 = math.tanh %158 : vector<1x32xf32>
    %160 = arith.mulf %155, %159 : vector<1x32xf32>
    %c0_25 = arith.constant 0 : index
    %c0_26 = arith.constant 0 : index
    %161 = vector.load %arg5[%c0_25, %c0_26] : memref<1x32xf32, #tpu.memory_space<vmem>>, vector<1x32xf32>
    tpu.vector_store %arg5[%c0_25, %c0_26], %160 {strides = array<i32>} : memref<1x32xf32, #tpu.memory_space<vmem>>, vector<1x32xf32>,
    return
  }
  func.func @transform_0(%arg0: i32) -> (i32, i32) {
    %c0_i32 = arith.constant 0 : i32
    %c0_i32_0 = arith.constant 0 : i32
    %c0_i32_1 = arith.constant 0 : i32
    return %c0_i32, %c0_i32_0 : i32, i32
  }
  func.func @transform_1(%arg0: i32) -> (i32, i32) {
    %c0_i32 = arith.constant 0 : i32
    %c0_i32_0 = arith.constant 0 : i32
    %c0_i32_1 = arith.constant 0 : i32
    return %c0_i32, %c0_i32_0 : i32, i32
  }
  func.func @transform_2(%arg0: i32) -> (i32, i32) {
    %c0_i32 = arith.constant 0 : i32
    %c0_i32_0 = arith.constant 0 : i32
    %c0_i32_1 = arith.constant 0 : i32
    return %c0_i32, %c0_i32_0 : i32, i32
  }
  func.func @transform_3(%arg0: i32) -> (i32, i32) {
    %c0_i32 = arith.constant 0 : i32
    %c0_i32_0 = arith.constant 0 : i32
    %c0_i32_1 = arith.constant 0 : i32
    return %c0_i32, %c0_i32_0 : i32, i32
  }
  func.func @transform_4(%arg0: i32) -> (i32, i32) {
    %c0_i32 = arith.constant 0 : i32
    %c0_i32_0 = arith.constant 0 : i32
    %c0_i32_1 = arith.constant 0 : i32
    return %c0_i32, %c0_i32_0 : i32, i32
  }
}

</mosaic_0001>

<bundles_post_ra>
// kernel: char_lstm_forward.1
= control target key start
LH: loop header
LB: loop body
LE: loop exit
PB: predicated region body
PF: predicated region fallthrough
CT: control target
= control target key end

     0   :  { %v954_v1 = vmov 0.0   ;;  %vm955_vm0 = vmmov 0   ;;  %vm35_vm1 = vcmask 130048   ;;  %s1116_s0 = inlined_call_operand.vmem [shape: bf16[8,16], index: 0, kind: input, shape index: {}]   ;;  %s1117_s1 = inlined_call_operand.vmem [shape: bf16[16,128], index: 1, kind: input, shape index: {}]   ;;  %s1118_s2 = inlined_call_operand.vmem [shape: bf16[32,128], index: 2, kind: input, shape index: {}]   ;;  %s1119_s3 = inlined_call_operand.vmem [shape: f32[1,128], index: 3, kind: input, shape index: {}]   ;;  %s1120_s4 = inlined_call_operand.hbm [shape: f32[1,32], index: 4, kind: output, shape index: {}]  }
   0x1   :  { %v863_v0 = vld [vmem:[%s1117_s1] sm:$0xff]   ;;  %787 = vmatprep.subr.bf16.mxu0 %v954_v1  ;;  %793 = vmatprep.subr.bf16.mxu1 %v954_v1  ;;  %v1004_v4 = vld [vmem:[%s1118_s2 + $0x8] sm:$0xff]  }
   0x2   :  { %v993_v2 = vld [vmem:[%s1118_s2] sm:$0xff]   ;;  %788 = vmatpush3.bf16.msra.mxu0 %v863_v0  ;;  %789 = vmatprep.mubr.msk.bf16.mxu0 %vm955_vm0, %v954_v1 }
   0x3   :  { %v19_v3 = vld [vmem:[%s1116_s0] sm:$0xf]  ;;  %794 = vmatpush3.bf16.msra.mxu1 %v993_v2  ;;  %797 = vmatprep.mubr.msk.bf16.mxu1 %vm955_vm0, %v954_v1 }
   0x4   :  { %795 = vmatprep.subr.bf16.mxu1 %v954_v1  ;;  %801 = vmatprep.subr.bf16.mxu0 %v954_v1 }
   0x5   :  { %9 = vsyncpa [#allocation3], 0  ;;  %790 = vmatmul.mubr.msk.bf16.vlgmr.msra.gmra.mrb[0].mxu0 %vm35_vm1, %v19_v3  ;;  %v956_v5 = vmov 0   ;;  %v741_v6 = vld [vmem:[%s1119_s3] ss:$0 sm:$0xff]  ;;  %s957_s22 = smov 64  }
   0x6   :  { %802 = vmatpush3.bf16.msra.mxu0 %v993_v2  ;;  %805 = vmatprep.mubr.msk.bf16.mxu0 %vm955_vm0, %v954_v1  ;;  %s958_s3 = smov 32   ;;  %vm95_vm2 = vcmask 261120   ;;  %s959_s23 = smov [#allocation2]   ;;  %vm725_vm3 = vcmask 261127  }
   0x7   :  { %796 = vmatpush3.bf16.msra.mxu1 %v1004_v4  ;;  %803 = vmatprep.subr.bf16.mxu0 %v954_v1  ;;  %s733_s24 = sshll.u32 %s959_s23, 4  ;;  %s734_s24 = int_to_ptr.vmem [resolvable:$true] %s733_s24 }
   0x8   :  { %809 = vmatprep.subr.bf16.mxu1 %v954_v1  ;;  %s930_s25 = scalar_lea.vmem %s734_s24, 16  ;;  %s934_s26 = scalar_lea.vmem %s734_s24, 32 }
   0x9   :  { %p931_p0 = scmp.ne.s32.totalorder %s734_s24, %s930_s25  ;;  %p935_p1 = scmp.lt.s32.totalorder %s734_s24, %s734_s24 }
   0xa   :  { %798 = vmatmul.mubr.bf16.vlgmr.msra.gmra.mrb[0].mxu1 %v956_v5  ;;  %804 = vmatpush3.bf16.msra.mxu0 %v1004_v4  ;;  %p936_p2 = scmp.lt.s32.totalorder %s934_s26, %s930_s25 }
   0xb   :  { %810 = vmatpush3.bf16.msra.mxu1 %v993_v2  ;;  %813 = vmatprep.mubr.msk.bf16.mxu1 %vm955_vm0, %v954_v1 }
   0xc   :  { %811 = vmatprep.subr.bf16.mxu1 %v954_v1  ;;  %817 = vmatprep.subr.bf16.mxu0 %v954_v1  ;;  %p937_p3 = por %p936_p2, %p935_p1 }
   0xe   :  { %p938_p4 = pnand %p937_p3, %p931_p0 }
   0xf   :  { %812 = vmatpush3.bf16.msra.mxu1 %v1004_v4 }
  0x10   :  { %825 = vmatprep.subr.bf16.mxu1 %v954_v1 }
  0xd8   :  { %v73_v7 = vpop.f32.mrb[0].mxu0 }
  0xd9   :  { %v791_v8 = vpop.f32.mrb[1].mxu0  ;;  %v1027_v9 = vadd.f32 %v741_v6, %v73_v7 }
  0xda   :  { %v76_v10 = vpop.f32.mrb[2].mxu0 }
  0xdb   :  { %v792_v11 = vpop.f32.mrb[3].mxu0 }
  0xdd   :  { %v133_v12 = vpop.f32.mrb[0].mxu1 }
  0xde   :  { %v139_v13 = vadd.f32 %v133_v12, %v1027_v9  ;;  %v799_v14 = vpop.f32.mrb[1].mxu1 }
  0xdf   :  { %v136_v15 = vpop.f32.mrb[2].mxu1 }
  0xe0   :  { %866 = vtanh.f32 %v139_v13  ;;  %v800_v16 = vpop.f32.mrb[3].mxu1  ;;  %v746_v18 = vmul.f32 -1.442695, %v139_v13 }
  0xe2   :  { %868 = vpow2.f32 %v746_v18 }
  0xea   :  { %v867_v17 = vpop.eup %866 }
  0xeb   :  { %149 = vrot.lane.b32.xlu0 %v867_v17, %s957_s22 }
  0xec   :  { %v869_v19 = vpop.eup %868 }
  0xed   :  { %v143_v20 = vadd.f32 1.0, %v869_v19 }
  0xef   :  { %870 = vrcp.f32 %v143_v20 }
  0xf9   :  { %v871_v21 = vpop.eup %870 }
  0xfa   :  { %v147_v24 = vmul.f32 0.0, %v871_v21 }
 0x15d   :  { %v150_v22 = vpop.permute.xlu0 %149 }
 0x15e   :  { %v152_v23 = vmul.f32 %v871_v21, %v150_v22 }
 0x160   :  { %154 = vrot.lane.b32.xlu0 %v152_v23, %s958_s3 }
 0x1d2   :  { %v155_v25 = vpop.permute.xlu0 %154 }
 0x1d3   :  { %v157_v26 = vadd.f32 %v155_v25, %v147_v24 }
 0x1d5   :  { %872 = vtanh.f32 %v157_v26  ;;  %v223_v45 = vrot.slane %v157_v26, 7 }
 0x1df   :  { %v873_v27 = vpop.eup %872 }
 0x1e0   :  { %160 = vrot.lane.b32.xlu1 %v873_v27, %s957_s22 }
 0x252   :  { %v161_v28 = vpop.permute.xlu1 %160 }
 0x253   :  { %v163_v29 = vmul.f32 %v871_v21, %v161_v28 }
 0x255   :  { %v164_v30 = vpack.c.bf16 %v163_v29, %v163_v29 }
 0x257   :  { %166 = vrot.lane.b32.xlu1 %v164_v30, %s958_s3 }
 0x2c9   :  { %v167_v31 = vpop.permute.xlu1 %166 }
 0x2ca   :  { %806 = vmatmul.mubr.msk.bf16.vlgmr.msra.gmra.mrb[4].mxu0 %vm95_vm2, %v167_v31 }
 0x2cb   :  { %818 = vmatpush3.bf16.msra.mxu0 %v993_v2  ;;  %821 = vmatprep.mubr.msk.bf16.mxu0 %vm955_vm0, %v954_v1 }
 0x2cc   :  { %819 = vmatprep.subr.bf16.mxu0 %v954_v1 }
 0x2cf   :  { %820 = vmatpush3.bf16.msra.mxu0 %v1004_v4 }
 0x2d0   :  { %833 = vmatprep.subr.bf16.mxu0 %v954_v1 }
 0x39d   :  { %v205_v32 = vpop.f32.mrb[4].mxu0 }
 0x39e   :  { %v212_v33 = vrot.slane %v205_v32, 7  ;;  %v807_v34 = vpop.f32.mrb[5].mxu0 }
 0x39f   :  { %v208_v35 = vpop.f32.mrb[6].mxu0 }
 0x3a0   :  { %v214_v36 = vadd.f32 %v212_v33, %v1027_v9  ;;  %v808_v37 = vpop.f32.mrb[7].mxu0 }
 0x3a2   :  { %874 = vtanh.f32 %v214_v36  ;;  %v748_v39 = vmul.f32 -1.442695, %v214_v36 }
 0x3a4   :  { %876 = vpow2.f32 %v748_v39 }
 0x3ac   :  { %v875_v38 = vpop.eup %874 }
 0x3ad   :  { %227 = vrot.lane.b32.xlu0 %v875_v38, %s957_s22 }
 0x3ae   :  { %v877_v40 = vpop.eup %876 }
 0x3af   :  { %v218_v41 = vadd.f32 1.0, %v877_v40 }
 0x3b1   :  { %878 = vrcp.f32 %v218_v41 }
 0x3bb   :  { %v879_v42 = vpop.eup %878 }
 0x3bc   :  { %v225_v46 = vmul.f32 %v879_v42, %v223_v45 }
 0x41f   :  { %v228_v43 = vpop.permute.xlu0 %227 }
 0x420   :  { %v230_v44 = vmul.f32 %v879_v42, %v228_v43 }
 0x422   :  { %232 = vrot.lane.b32.xlu1 %v230_v44, %s958_s3 }
 0x494   :  { %v233_v47 = vpop.permute.xlu1 %232 }
 0x495   :  { %v235_v48 = vadd.f32 %v233_v47, %v225_v46 }
 0x497   :  { %880 = vtanh.f32 %v235_v48  ;;  %v303_v7 = vrot.slane %v235_v48, 7 }
 0x4a1   :  { %v881_v49 = vpop.eup %880 }
 0x4a2   :  { %238 = vrot.lane.b32.xlu0 %v881_v49, %s957_s22 }
 0x514   :  { %v239_v50 = vpop.permute.xlu0 %238 }
 0x515   :  { %v241_v51 = vmul.f32 %v879_v42, %v239_v50 }
 0x517   :  { %v242_v52 = vpack.c.bf16 %v241_v51, %v241_v51 }
 0x519   :  { %v244_v53 = vshrl.u32 %v242_v52, 16 }
 0x51b   :  { %246 = vrot.lane.b32.xlu1 %v244_v53, %s958_s3 }
 0x58d   :  { %v247_v54 = vpop.permute.xlu1 %246 }
 0x58e   :  { %814 = vmatmul.mubr.msk.bf16.vlgmr.msra.gmra.mrb[4].mxu1 %vm95_vm2, %v247_v54 }
 0x58f   :  { %826 = vmatpush3.bf16.msra.mxu1 %v993_v2  ;;  %829 = vmatprep.mubr.msk.bf16.mxu1 %vm955_vm0, %v954_v1 }
 0x590   :  { %827 = vmatprep.subr.bf16.mxu1 %v954_v1 }
 0x593   :  { %828 = vmatpush3.bf16.msra.mxu1 %v1004_v4 }
 0x594   :  { %841 = vmatprep.subr.bf16.mxu1 %v954_v1 }
 0x661   :  { %v285_v55 = vpop.f32.mrb[4].mxu1 }
 0x662   :  { %v292_v56 = vrot.slane %v285_v55, 6  ;;  %v815_v57 = vpop.f32.mrb[5].mxu1 }
 0x663   :  { %v288_v58 = vpop.f32.mrb[6].mxu1 }
 0x664   :  { %v294_v59 = vadd.f32 %v292_v56, %v1027_v9  ;;  %v816_v60 = vpop.f32.mrb[7].mxu1 }
 0x666   :  { %882 = vtanh.f32 %v294_v59  ;;  %v750_v62 = vmul.f32 -1.442695, %v294_v59 }
 0x668   :  { %884 = vpow2.f32 %v750_v62 }
 0x670   :  { %v883_v61 = vpop.eup %882 }
 0x671   :  { %307 = vrot.lane.b32.xlu0 %v883_v61, %s957_s22 }
 0x672   :  { %v885_v63 = vpop.eup %884 }
 0x673   :  { %v298_v0 = vadd.f32 1.0, %v885_v63 }
 0x675   :  { %886 = vrcp.f32 %v298_v0 }
 0x67f   :  { %v887_v3 = vpop.eup %886 }
 0x680   :  { %v305_v8 = vmul.f32 %v887_v3, %v303_v7 }
 0x6e3   :  { %v308_v5 = vpop.permute.xlu0 %307 }
 0x6e4   :  { %v310_v6 = vmul.f32 %v887_v3, %v308_v5 }
 0x6e6   :  { %312 = vrot.lane.b32.xlu1 %v310_v6, %s958_s3 }
 0x758   :  { %v313_v10 = vpop.permute.xlu1 %312 }
 0x759   :  { %v315_v11 = vadd.f32 %v313_v10, %v305_v8 }
 0x75b   :  { %888 = vtanh.f32 %v315_v11  ;;  %v382_v31 = vrot.slane %v315_v11, 7 }
 0x765   :  { %v889_v12 = vpop.eup %888 }
 0x766   :  { %318 = vrot.lane.b32.xlu0 %v889_v12, %s957_s22 }
 0x7d8   :  { %v319_v13 = vpop.permute.xlu0 %318 }
 0x7d9   :  { %v321_v14 = vmul.f32 %v887_v3, %v319_v13 }
 0x7db   :  { %v322_v15 = vpack.c.bf16 %v321_v14, %v321_v14 }
 0x7dd   :  { %v324_v16 = vrot.slane %v322_v15, 1 }
 0x7df   :  { %325 = vrot.lane.b32.xlu1 %v324_v16, %s958_s3 }
 0x851   :  { %v326_v17 = vpop.permute.xlu1 %325 }
 0x852   :  { %822 = vmatmul.mubr.msk.bf16.vlgmr.msra.gmra.mrb[8].mxu0 %vm95_vm2, %v326_v17 }
 0x853   :  { %834 = vmatpush3.bf16.msra.mxu0 %v993_v2  ;;  %837 = vmatprep.mubr.msk.bf16.mxu0 %vm955_vm0, %v954_v1 }
 0x854   :  { %835 = vmatprep.subr.bf16.mxu0 %v954_v1 }
 0x857   :  { %836 = vmatpush3.bf16.msra.mxu0 %v1004_v4 }
 0x858   :  { %849 = vmatprep.subr.bf16.mxu0 %v954_v1 }
 0x925   :  { %v364_v18 = vpop.f32.mrb[8].mxu0 }
 0x926   :  { %v371_v19 = vrot.slane %v364_v18, 5  ;;  %v823_v20 = vpop.f32.mrb[9].mxu0 }
 0x927   :  { %v367_v21 = vpop.f32.mrb[10].mxu0 }
 0x928   :  { %v373_v22 = vadd.f32 %v371_v19, %v1027_v9  ;;  %v824_v23 = vpop.f32.mrb[11].mxu0 }
 0x92a   :  { %890 = vtanh.f32 %v373_v22  ;;  %v752_v25 = vmul.f32 -1.442695, %v373_v22 }
 0x92c   :  { %892 = vpow2.f32 %v752_v25 }
 0x934   :  { %v891_v24 = vpop.eup %890 }
 0x935   :  { %386 = vrot.lane.b32.xlu0 %v891_v24, %s957_s22 }
 0x936   :  { %v893_v26 = vpop.eup %892 }
 0x937   :  { %v377_v27 = vadd.f32 1.0, %v893_v26 }
 0x939   :  { %894 = vrcp.f32 %v377_v27 }
 0x943   :  { %v895_v28 = vpop.eup %894 }
 0x944   :  { %v384_v32 = vmul.f32 %v895_v28, %v382_v31 }
 0x9a7   :  { %v387_v29 = vpop.permute.xlu0 %386 }
 0x9a8   :  { %v389_v30 = vmul.f32 %v895_v28, %v387_v29 }
 0x9aa   :  { %391 = vrot.lane.b32.xlu1 %v389_v30, %s958_s3 }
 0xa1c   :  { %v392_v33 = vpop.permute.xlu1 %391 }
 0xa1d   :  { %v394_v34 = vadd.f32 %v392_v33, %v384_v32 }
 0xa1f   :  { %896 = vtanh.f32 %v394_v34  ;;  %v463_v55 = vrot.slane %v394_v34, 7 }
 0xa29   :  { %v897_v35 = vpop.eup %896 }
 0xa2a   :  { %397 = vrot.lane.b32.xlu0 %v897_v35, %s957_s22 }
 0xa9c   :  { %v398_v36 = vpop.permute.xlu0 %397 }
 0xa9d   :  { %v400_v37 = vmul.f32 %v895_v28, %v398_v36 }
 0xa9f   :  { %v401_v38 = vpack.c.bf16 %v400_v37, %v400_v37 }
 0xaa1   :  { %v403_v39 = vshrl.u32 %v401_v38, 16 }
 0xaa3   :  { %v405_v40 = vrot.slane %v403_v39, 1 }
 0xaa5   :  { %406 = vrot.lane.b32.xlu1 %v405_v40, %s958_s3 }
 0xb17   :  { %v407_v41 = vpop.permute.xlu1 %406 }
 0xb18   :  { %830 = vmatmul.mubr.msk.bf16.vlgmr.msra.gmra.mrb[8].mxu1 %vm95_vm2, %v407_v41 }
 0xb19   :  { %842 = vmatpush3.bf16.msra.mxu1 %v993_v2  ;;  %845 = vmatprep.mubr.msk.bf16.mxu1 %vm955_vm0, %v954_v1 }
 0xb1a   :  { %843 = vmatprep.subr.bf16.mxu1 %v954_v1 }
 0xb1d   :  { %844 = vmatpush3.bf16.msra.mxu1 %v1004_v4 }
 0xbeb   :  { %v445_v42 = vpop.f32.mrb[8].mxu1 }
 0xbec   :  { %v452_v43 = vrot.slane %v445_v42, 4  ;;  %v831_v44 = vpop.f32.mrb[9].mxu1 }
 0xbed   :  { %v448_v45 = vpop.f32.mrb[10].mxu1 }
 0xbee   :  { %v454_v46 = vadd.f32 %v452_v43, %v1027_v9  ;;  %v832_v47 = vpop.f32.mrb[11].mxu1 }
 0xbf0   :  { %898 = vtanh.f32 %v454_v46  ;;  %v754_v49 = vmul.f32 -1.442695, %v454_v46 }
 0xbf2   :  { %900 = vpow2.f32 %v754_v49 }
 0xbfa   :  { %v899_v48 = vpop.eup %898 }
 0xbfb   :  { %467 = vrot.lane.b32.xlu0 %v899_v48, %s957_s22 }
 0xbfc   :  { %v901_v50 = vpop.eup %900 }
 0xbfd   :  { %v458_v51 = vadd.f32 1.0, %v901_v50 }
 0xbff   :  { %902 = vrcp.f32 %v458_v51 }
 0xc09   :  { %v903_v52 = vpop.eup %902 }
 0xc0a   :  { %v465_v56 = vmul.f32 %v903_v52, %v463_v55 }
 0xc6d   :  { %v468_v53 = vpop.permute.xlu0 %467 }
 0xc6e   :  { %v470_v54 = vmul.f32 %v903_v52, %v468_v53 }
 0xc70   :  { %472 = vrot.lane.b32.xlu1 %v470_v54, %s958_s3 }
 0xce2   :  { %v473_v57 = vpop.permute.xlu1 %472 }
 0xce3   :  { %v475_v58 = vadd.f32 %v473_v57, %v465_v56 }
 0xce5   :  { %904 = vtanh.f32 %v475_v58 }
 0xcef   :  { %v905_v59 = vpop.eup %904 }
 0xcf0   :  { %478 = vrot.lane.b32.xlu0 %v905_v59, %s957_s22 }
 0xd62   :  { %v479_v60 = vpop.permute.xlu0 %478 }
 0xd63   :  { %v481_v61 = vmul.f32 %v903_v52, %v479_v60 }
 0xd65   :  { %v482_v62 = vpack.c.bf16 %v481_v61, %v481_v61 }
 0xd67   :  { %v484_v63 = vrot.slane %v482_v62, 2 }
 0xd69   :  { %485 = vrot.lane.b32.xlu1 %v484_v63, %s958_s3 }
 0xddb   :  { %v486_v0 = vpop.permute.xlu1 %485 }
 0xddc   :  { %838 = vmatmul.mubr.msk.bf16.vlgmr.msra.gmra.mrb[12].mxu0 %vm95_vm2, %v486_v0 }
 0xddd   :  { %850 = vmatpush3.bf16.msra.mxu0 %v993_v2  ;;  %853 = vmatprep.mubr.msk.bf16.mxu0 %vm955_vm0, %v954_v1 }
 0xdde   :  { %851 = vmatprep.subr.bf16.mxu0 %v954_v1 }
 0xde1   :  { %852 = vmatpush3.bf16.msra.mxu0 %v1004_v4  ;;  %v542_v4 = vrot.slane %v475_v58, 7 }
 0xeaf   :  { %v524_v3 = vpop.f32.mrb[12].mxu0 }
 0xeb0   :  { %v531_v5 = vrot.slane %v524_v3, 3  ;;  %v839_v6 = vpop.f32.mrb[13].mxu0 }
 0xeb1   :  { %v527_v7 = vpop.f32.mrb[14].mxu0 }
 0xeb2   :  { %v533_v8 = vadd.f32 %v531_v5, %v1027_v9  ;;  %v840_v10 = vpop.f32.mrb[15].mxu0 }
 0xeb4   :  { %906 = vtanh.f32 %v533_v8  ;;  %v756_v12 = vmul.f32 -1.442695, %v533_v8 }
 0xeb6   :  { %908 = vpow2.f32 %v756_v12 }
 0xebe   :  { %v907_v11 = vpop.eup %906 }
 0xebf   :  { %546 = vrot.lane.b32.xlu0 %v907_v11, %s957_s22 }
 0xec0   :  { %v909_v2 = vpop.eup %908 }
 0xec1   :  { %v537_v13 = vadd.f32 1.0, %v909_v2 }
 0xec3   :  { %910 = vrcp.f32 %v537_v13 }
 0xecd   :  { %v911_v14 = vpop.eup %910 }
 0xece   :  { %v544_v16 = vmul.f32 %v911_v14, %v542_v4 }
 0xf31   :  { %v547_v1 = vpop.permute.xlu0 %546 }
 0xf32   :  { %v549_v15 = vmul.f32 %v911_v14, %v547_v1 }
 0xf34   :  { %551 = vrot.lane.b32.xlu1 %v549_v15, %s958_s3 }
 0xfa6   :  { %v552_v17 = vpop.permute.xlu1 %551 }
 0xfa7   :  { %v554_v18 = vadd.f32 %v552_v17, %v544_v16 }
 0xfa9   :  { %912 = vtanh.f32 %v554_v18  ;;  %v623_v39 = vrot.slane %v554_v18, 7 }
 0xfb3   :  { %v913_v19 = vpop.eup %912 }
 0xfb4   :  { %557 = vrot.lane.b32.xlu0 %v913_v19, %s957_s22 }
0x1026   :  { %v558_v20 = vpop.permute.xlu0 %557 }
0x1027   :  { %v560_v21 = vmul.f32 %v911_v14, %v558_v20 }
0x1029   :  { %v561_v22 = vpack.c.bf16 %v560_v21, %v560_v21 }
0x102b   :  { %v563_v23 = vshrl.u32 %v561_v22, 16 }
0x102d   :  { %v565_v24 = vrot.slane %v563_v23, 2 }
0x102f   :  { %566 = vrot.lane.b32.xlu1 %v565_v24, %s958_s3 }
0x10a1   :  { %v567_v25 = vpop.permute.xlu1 %566 }
0x10a2   :  { %846 = vmatmul.mubr.msk.bf16.vlgmr.msra.gmra.mrb[12].mxu1 %vm95_vm2, %v567_v25 }
0x1175   :  { %v605_v26 = vpop.f32.mrb[12].mxu1 }
0x1176   :  { %v612_v27 = vrot.slane %v605_v26, 2  ;;  %v847_v28 = vpop.f32.mrb[13].mxu1 }
0x1177   :  { %v608_v29 = vpop.f32.mrb[14].mxu1 }
0x1178   :  { %v614_v30 = vadd.f32 %v612_v27, %v1027_v9  ;;  %v848_v31 = vpop.f32.mrb[15].mxu1 }
0x117a   :  { %914 = vtanh.f32 %v614_v30  ;;  %v758_v33 = vmul.f32 -1.442695, %v614_v30 }
0x117c   :  { %916 = vpow2.f32 %v758_v33 }
0x1184   :  { %v915_v32 = vpop.eup %914 }
0x1185   :  { %627 = vrot.lane.b32.xlu0 %v915_v32, %s957_s22 }
0x1186   :  { %v917_v34 = vpop.eup %916 }
0x1187   :  { %v618_v35 = vadd.f32 1.0, %v917_v34 }
0x1189   :  { %918 = vrcp.f32 %v618_v35 }
0x1193   :  { %v919_v36 = vpop.eup %918 }
0x1194   :  { %v625_v40 = vmul.f32 %v919_v36, %v623_v39 }
0x11f7   :  { %v628_v37 = vpop.permute.xlu0 %627 }
0x11f8   :  { %v630_v38 = vmul.f32 %v919_v36, %v628_v37 }
0x11fa   :  { %632 = vrot.lane.b32.xlu1 %v630_v38, %s958_s3 }
0x126c   :  { %v633_v41 = vpop.permute.xlu1 %632 }
0x126d   :  { %v635_v42 = vadd.f32 %v633_v41, %v625_v40 }
0x126f   :  { %920 = vtanh.f32 %v635_v42  ;;  %v702_v62 = vrot.slane %v635_v42, 7 }
0x1279   :  { %v921_v43 = vpop.eup %920 }
0x127a   :  { %638 = vrot.lane.b32.xlu0 %v921_v43, %s957_s22 }
0x12ec   :  { %v639_v44 = vpop.permute.xlu0 %638 }
0x12ed   :  { %v641_v45 = vmul.f32 %v919_v36, %v639_v44 }
0x12ef   :  { %v642_v46 = vpack.c.bf16 %v641_v45, %v641_v45 }
0x12f1   :  { %v644_v47 = vrot.slane %v642_v46, 3 }
0x12f3   :  { %645 = vrot.lane.b32.xlu1 %v644_v47, %s958_s3 }
0x1365   :  { %v646_v48 = vpop.permute.xlu1 %645 }
0x1366   :  { %854 = vmatmul.mubr.msk.bf16.vlgmr.msra.gmra.mrb[16].mxu0 %vm95_vm2, %v646_v48 }
0x1439   :  { %v684_v49 = vpop.f32.mrb[16].mxu0 }
0x143a   :  { %v691_v50 = vrot.slane %v684_v49, 1  ;;  %v855_v51 = vpop.f32.mrb[17].mxu0 }
0x143b   :  { %v687_v52 = vpop.f32.mrb[18].mxu0 }
0x143c   :  { %v693_v53 = vadd.f32 %v691_v50, %v1027_v9  ;;  %v856_v54 = vpop.f32.mrb[19].mxu0 }
0x143e   :  { %922 = vtanh.f32 %v693_v53  ;;  %v760_v56 = vmul.f32 -1.442695, %v693_v53 }
0x1440   :  { %924 = vpow2.f32 %v760_v56 }
0x1448   :  { %v923_v55 = vpop.eup %922 }
0x1449   :  { %706 = vrot.lane.b32.xlu0 %v923_v55, %s957_s22 }
0x144a   :  { %v925_v57 = vpop.eup %924 }
0x144b   :  { %v697_v58 = vadd.f32 1.0, %v925_v57 }
0x144d   :  { %926 = vrcp.f32 %v697_v58 }
0x1457   :  { %v927_v59 = vpop.eup %926 }
0x1458   :  { %v704_v63 = vmul.f32 %v927_v59, %v702_v62 }
0x14bb   :  { %v707_v60 = vpop.permute.xlu0 %706 }
0x14bc   :  { %v709_v61 = vmul.f32 %v927_v59, %v707_v60 }
0x14be   :  { %711 = vrot.lane.b32.xlu1 %v709_v61, %s958_s3 }
0x1530   :  { %v712_v0 = vpop.permute.xlu1 %711 }
0x1531   :  { %v714_v3 = vadd.f32 %v712_v0, %v704_v63 }
0x1533   :  { %928 = vtanh.f32 %v714_v3 }
0x153d   :  { %v929_v9 = vpop.eup %928 }
0x153e   :  { %717 = vrot.lane.b32.xlu0 %v929_v9, %s957_s22 }
0x15b0   :  { %v718_v5 = vpop.permute.xlu0 %717 }
0x15b1   :  { %v720_v6 = vmul.f32 %v927_v59, %v718_v5 }
0x15b3   :  { %722 = vrot.lane.b32.xlu1 %v720_v6, %s958_s3 }
0x1625   :  { %v723_v7 = vpop.permute.xlu1 %722 }
0x1626   :  { %726 = vst.msk [vmem:[#allocation2 - $0x7] sm:$0x80] %vm725_vm3, %v723_v7 }
0x1627   :  { %941 = shalt.err (!%p938_p4)
}
0x1628   :  { %s942_s29 = scalar_lea.hbm %s1120_s4, 16 }
0x1629   :  { %p943_p5 = scmp.ne.s32.totalorder %s1120_s4, %s942_s29  ;;  %p946_p6 = scmp.lt.u32.totalorder %s942_s29, %s1120_s4 }
0x162b   :  { %p948_p7 = pnand %p946_p6, %p943_p5 }
0x162d   :  { %951 = shalt.err (!%p948_p7)
}
0x162e   :  { %736 = dma.vmem_to_hbm [thread:$0]  %s734_s24, 16, %s1120_s4, [#allocation3]  }
0x162f   :  { %952 = dma.done.wait [#allocation3], 16  }
0x1630   :  { %953 = vsyncadd [#allocation3], 4294967280 }
0x1631   :  { %740 = vsyncpa [#allocation3], 1 }

</bundles_post_ra>
